<compile_context>
chip_gen: v5e
topology: v5e:2x2
jax: 0.10.0
libtpu: 0.0.40
codegen_flags: <defaults>
</compile_context>

<pallas_src>
import jax
import jax.numpy as jnp
from jax.experimental import pallas as pl
from jax.experimental.pallas import tpu as pltpu

LANE = 128      # TPU lane width
HIDDEN = 126    # real hidden width of the PyTorch model


def _ik_mlp_kernel(x_ref, t_ref, w1a_ref, w1b_ref, b1_ref,
                   w2_ref, b2_ref, w4_ref, b4_ref, o_ref):
    """relu(relu(x@W1a + t@W1b + b1) @ W2 + b2) @ W4 + b4 (bf16 MXU, f32 accum)."""
    x = x_ref[...].astype(jnp.bfloat16)
    t = t_ref[...].astype(jnp.bfloat16)

    h = jnp.dot(x, w1a_ref[...], preferred_element_type=jnp.float32)
    h = h + jnp.dot(t, w1b_ref[...], preferred_element_type=jnp.float32)
    h = jnp.maximum(h + b1_ref[...], 0.0).astype(jnp.bfloat16)

    h = jnp.dot(h, w2_ref[...], preferred_element_type=jnp.float32) + b2_ref[...]
    h = jnp.maximum(h, 0.0).astype(jnp.bfloat16)

    # Last layer computes only the real `latent` output columns; the store is a
    # masked vst (63 < 128 lanes) but saves a whole extra XLA slice op + traffic.
    y = jnp.dot(h, w4_ref[...], preferred_element_type=jnp.float32) + b4_ref[...]
    o_ref[...] = y.astype(o_ref.dtype)


def _round_up(n, m):
    return ((n + m - 1) // m) * m


def _choose_batch_tile(B, max_tile=1024):
    """Rows per grid step.

    Small batches: a single block (launch/step overhead dominates anyway).
    Large batches: big tiles (amortize the ~0.35 us/step overhead) capped at
    1024, but always >= 2 grid steps so the "parallel" axis can shard over
    v7x's two TensorCores.
    """
    if B <= 128:
        return B
    return min(max_tile, _round_up((B + 1) // 2, 8))


def ik_model_forward(x, targets, kparams, latent_size, out_dtype=jnp.bfloat16):
    """x: (B, latent_size), targets: (B, 3*n_targets) -> (B, latent_size) out_dtype."""
    w1a, w1b = kparams["w1a"], kparams["w1b"]
    w2, w4 = kparams["w2"], kparams["w4"]
    b1, b2, b4 = kparams["b1"], kparams["b2"], kparams["b4"]

    B, Fx = x.shape
    Ft = targets.shape[1]

    tm = _choose_batch_tile(B)
    grid = (pl.cdiv(B, tm),)

    rep = lambda i: (0, 0)    # resident (non-streamed) operands

    flops = 2 * B * HIDDEN * (Fx + Ft + HIDDEN + latent_size)
    out_itemsize = jnp.dtype(out_dtype).itemsize
    bytes_accessed = (
        x.size * x.dtype.itemsize
        + targets.size * targets.dtype.itemsize
        + sum(int(v.size) * v.dtype.itemsize for v in kparams.values())
        + B * latent_size * out_itemsize
    )

    return pl.pallas_call(
        _ik_mlp_kernel,
        out_shape=jax.ShapeDtypeStruct((B, latent_size), out_dtype),
        grid=grid,
        in_specs=[
            pl.BlockSpec((tm, Fx), lambda i: (i, 0)),   # x        (streamed per tile)
            pl.BlockSpec((tm, Ft), lambda i: (i, 0)),   # targets  (streamed per tile)
            pl.BlockSpec(w1a.shape, rep),               # weights/biases stay resident
            pl.BlockSpec(w1b.shape, rep),
            pl.BlockSpec(b1.shape, rep),
            pl.BlockSpec(w2.shape, rep),
            pl.BlockSpec(b2.shape, rep),
            pl.BlockSpec(w4.shape, rep),
            pl.BlockSpec(b4.shape, rep),
        ],
        out_specs=pl.BlockSpec((tm, latent_size), lambda i: (i, 0)),
        compiler_params=pltpu.CompilerParams(dimension_semantics=("parallel",)),
        cost_estimate=pl.CostEstimate(
            flops=flops, transcendentals=0, bytes_accessed=bytes_accessed),
    )(x, targets, w1a, w1b, b1, w2, b2, w4, b4)


def init_torch_like_params(key, latent_size=63, n_targets=2, dtype=jnp.float32):
    """PyTorch-layout params (weight: (out, in)) with nn.Linear-style uniform init.

    fc3 is created (parity with the module) but never used in forward.
    """
    input_size = latent_size + 3 * n_targets
    dims = {
        "fc1": (HIDDEN, input_size),
        "fc2": (HIDDEN, HIDDEN),
        "fc3": (HIDDEN, HIDDEN),        # declared but unused in forward
        "fc4": (latent_size, HIDDEN),
    }
    params = {}
    for name, (fan_out, fan_in) in dims.items():
        key, kw, kb = jax.random.split(key, 3)
        bound = 1.0 / float(fan_in) ** 0.5
        params[f"{name}.weight"] = jax.random.uniform(
            kw, (fan_out, fan_in), dtype=dtype, minval=-bound, maxval=bound)
        params[f"{name}.bias"] = jax.random.uniform(
            kb, (fan_out,), dtype=dtype, minval=-bound, maxval=bound)
    return params


def pack_ik_params(p, latent_size=63):
    """Kernel layout: transpose to (in, out), split fc1 by [latent | targets].

    Hidden (126) feature dims are zero-padded to the 128-lane width so the
    hidden-axis matmuls / bias adds / relus are lane-dense (relu(0)=0, so the
    real columns are unchanged).  The final layer keeps its real output width
    so the kernel can store (tm, latent) directly -- no wrapper-side slice.
    Weights -> bf16 (single-pass MXU), biases -> f32.
    """
    def pad2(a, rows, cols):
        return jnp.pad(a, ((0, rows - a.shape[0]), (0, cols - a.shape[1])))

    w1 = p["fc1.weight"].T                 # (in, 126)
    w1a = w1[:latent_size, :]              # (latent, 126)
    w1b = w1[latent_size:, :]              # (3*n_targets, 126)
    w2 = p["fc2.weight"].T                 # (126, 126)
    w4 = p["fc4.weight"].T                 # (126, latent)

    return {
        "w1a": pad2(w1a, w1a.shape[0], LANE).astype(jnp.bfloat16),   # (latent, 128)
        "w1b": pad2(w1b, w1b.shape[0], LANE).astype(jnp.bfloat16),   # (3*nt, 128)
        "w2":  pad2(w2, LANE, LANE).astype(jnp.bfloat16),            # (128, 128)
        "w4":  pad2(w4, LANE, latent_size).astype(jnp.bfloat16),     # (128, latent)
        "b1":  jnp.pad(p["fc1.bias"], (0, LANE - HIDDEN)).reshape(1, LANE).astype(jnp.float32),
        "b2":  jnp.pad(p["fc2.bias"], (0, LANE - HIDDEN)).reshape(1, LANE).astype(jnp.float32),
        "b4":  p["fc4.bias"].reshape(1, latent_size).astype(jnp.float32),
    }


def _reference_forward(x, targets, p):
    """Pure-JAX f32 reference matching the PyTorch forward."""
    h = jnp.concatenate([x, targets], axis=-1)
    h = jnp.maximum(h @ p["fc1.weight"].T + p["fc1.bias"], 0.0)
    h = jnp.maximum(h @ p["fc2.weight"].T + p["fc2.bias"], 0.0)
    return h @ p["fc4.weight"].T + p["fc4.bias"]


if __name__ == "__main__":
    latent_size = 63
    targets_names = ["hand_l", "hand_r"]      # each target contributes xyz
    n_targets = len(targets_names)

    key = jax.random.PRNGKey(0)
    key, kparam = jax.random.split(key)
    torch_params = init_torch_like_params(kparam, latent_size, n_targets)
    kernel_params = pack_ik_params(torch_params, latent_size)

    # (1) B=8: the realistic single-block IK-solver batch.
    # (2) B=200: multi-step grid (tm=104, 2 steps) with a partial tail block,
    #     exercising Pallas' masking of streamed inputs and the output store
    #     (reviewer correctness concern).
    for batch in (8, 200):
        key, kx, kt = jax.random.split(key, 3)
        x = jax.random.normal(kx, (batch, latent_size), dtype=jnp.float32)
        tgt = jax.random.normal(kt, (batch, n_targets * 3), dtype=jnp.float32)

        out = ik_model_forward(x, tgt, kernel_params, latent_size)
        out = jax.block_until_ready(out)
        assert out.shape == (batch, latent_size), out.shape
        assert out.dtype == jnp.bfloat16, out.dtype

        ref = _reference_forward(x, tgt, torch_params)
        # bf16 MXU operands + bf16 inter-layer activations + bf16 output vs a
        # pure-f32 reference: tolerance reflects ~3 layers of bf16 rounding.
        out_f32 = out.astype(jnp.float32)
        max_diff = float(jnp.max(jnp.abs(out_f32 - ref)))
        assert jnp.allclose(out_f32, ref, atol=7.5e-2, rtol=5e-2), (
            f"batch={batch}: mismatch vs reference, max abs diff {max_diff}")

    print("KERNEL_OK")
</pallas_src>

<mosaic_0001>
module attributes {stable_mosaic.version = 11 : i64} {
  func.func @_ik_mlp_kernel(%arg0: i32, %arg1: memref<8x63xf32, #tpu.memory_space<vmem>>, %arg2: memref<8x6xf32, #tpu.memory_space<vmem>>, %arg3: memref<63x128xbf16, #tpu.memory_space<vmem>>, %arg4: memref<6x128xbf16, #tpu.memory_space<vmem>>, %arg5: memref<1x128xf32, #tpu.memory_space<vmem>>, %arg6: memref<128x128xbf16, #tpu.memory_space<vmem>>, %arg7: memref<1x128xf32, #tpu.memory_space<vmem>>, %arg8: memref<128x63xbf16, #tpu.memory_space<vmem>>, %arg9: memref<1x63xf32, #tpu.memory_space<vmem>>, %arg10: memref<8x63xbf16, #tpu.memory_space<vmem>>) attributes {dimension_semantics = [#tpu.dimension_semantics<parallel>], iteration_bounds = array<i64: 1>, scalar_prefetch = 0 : i64, scratch_operands = 0 : i64, tpu.core_type = #tpu.core_type<tc>, window_params = [{transform_indices = @transform_0, window_bounds = array<i64: 8, 63>}, {transform_indices = @transform_1, window_bounds = array<i64: 8, 6>}, {pipeline_mode = #tpu.pipeline_mode<synchronous>, transform_indices = @transform_2, window_bounds = array<i64: 63, 128>}, {pipeline_mode = #tpu.pipeline_mode<synchronous>, transform_indices = @transform_3, window_bounds = array<i64: 6, 128>}, {pipeline_mode = #tpu.pipeline_mode<synchronous>, transform_indices = @transform_4, window_bounds = array<i64: 1, 128>}, {pipeline_mode = #tpu.pipeline_mode<synchronous>, transform_indices = @transform_5, window_bounds = array<i64: 128, 128>}, {pipeline_mode = #tpu.pipeline_mode<synchronous>, transform_indices = @transform_6, window_bounds = array<i64: 1, 128>}, {pipeline_mode = #tpu.pipeline_mode<synchronous>, transform_indices = @transform_7, window_bounds = array<i64: 128, 63>}, {pipeline_mode = #tpu.pipeline_mode<synchronous>, transform_indices = @transform_8, window_bounds = array<i64: 1, 63>}, {transform_indices = @transform_9, window_bounds = array<i64: 8, 63>}]} {
    %c0 = arith.constant 0 : index
    %c0_0 = arith.constant 0 : index
    %0 = vector.load %arg1[%c0, %c0_0] : memref<8x63xf32, #tpu.memory_space<vmem>>, vector<8x63xf32>
    %1 = arith.truncf %0 : vector<8x63xf32> to vector<8x63xbf16>
    %c0_1 = arith.constant 0 : index
    %c0_2 = arith.constant 0 : index
    %2 = vector.load %arg2[%c0_1, %c0_2] : memref<8x6xf32, #tpu.memory_space<vmem>>, vector<8x6xf32>
    %3 = arith.truncf %2 : vector<8x6xf32> to vector<8x6xbf16>
    %c0_3 = arith.constant 0 : index
    %c0_4 = arith.constant 0 : index
    %4 = vector.load %arg3[%c0_3, %c0_4] : memref<63x128xbf16, #tpu.memory_space<vmem>>, vector<63x128xbf16>
    %cst = arith.constant dense<0.000000e+00> : vector<8x128xf32>
    %5 = tpu.matmul %1, %4, %cst {dimension_numbers = #tpu.dot_dimension_numbers<[1], [0], [0], [1], [0, 0, 1, 1], [], []>} : vector<8x63xbf16>, vector<63x128xbf16>, vector<8x128xf32> -> vector<8x128xf32>
    %c0_5 = arith.constant 0 : index
    %c0_6 = arith.constant 0 : index
    %6 = vector.load %arg4[%c0_5, %c0_6] : memref<6x128xbf16, #tpu.memory_space<vmem>>, vector<6x128xbf16>
    %cst_7 = arith.constant dense<0.000000e+00> : vector<8x128xf32>
    %7 = tpu.matmul %3, %6, %cst_7 {dimension_numbers = #tpu.dot_dimension_numbers<[1], [0], [0], [1], [0, 0, 1, 1], [], []>} : vector<8x6xbf16>, vector<6x128xbf16>, vector<8x128xf32> -> vector<8x128xf32>
    %8 = arith.addf %5, %7 : vector<8x128xf32>
    %c0_8 = arith.constant 0 : index
    %c0_9 = arith.constant 0 : index
    %9 = vector.load %arg5[%c0_8, %c0_9] : memref<1x128xf32, #tpu.memory_space<vmem>>, vector<1x128xf32>
    %10 = vector.broadcast %9 : vector<1x128xf32> to vector<8x128xf32>
    %11 = arith.addf %8, %10 : vector<8x128xf32>
    %cst_10 = arith.constant 0.000000e+00 : f32
    %12 = vector.broadcast %cst_10 : f32 to vector<8x128xf32>
    %13 = arith.maximumf %11, %12 : vector<8x128xf32>
    %14 = arith.truncf %13 : vector<8x128xf32> to vector<8x128xbf16>
    %c0_11 = arith.constant 0 : index
    %c0_12 = arith.constant 0 : index
    %15 = vector.load %arg6[%c0_11, %c0_12] : memref<128x128xbf16, #tpu.memory_space<vmem>>, vector<128x128xbf16>
    %cst_13 = arith.constant dense<0.000000e+00> : vector<8x128xf32>
    %16 = tpu.matmul %14, %15, %cst_13 {dimension_numbers = #tpu.dot_dimension_numbers<[1], [0], [0], [1], [0, 0, 1, 1], [], []>} : vector<8x128xbf16>, vector<128x128xbf16>, vector<8x128xf32> -> vector<8x128xf32>
    %c0_14 = arith.constant 0 : index
    %c0_15 = arith.constant 0 : index
    %17 = vector.load %arg7[%c0_14, %c0_15] : memref<1x128xf32, #tpu.memory_space<vmem>>, vector<1x128xf32>
    %18 = vector.broadcast %17 : vector<1x128xf32> to vector<8x128xf32>
    %19 = arith.addf %16, %18 : vector<8x128xf32>
    %cst_16 = arith.constant 0.000000e+00 : f32
    %20 = vector.broadcast %cst_16 : f32 to vector<8x128xf32>
    %21 = arith.maximumf %19, %20 : vector<8x128xf32>
    %22 = arith.truncf %21 : vector<8x128xf32> to vector<8x128xbf16>
    %c0_17 = arith.constant 0 : index
    %c0_18 = arith.constant 0 : index
    %23 = vector.load %arg8[%c0_17, %c0_18] : memref<128x63xbf16, #tpu.memory_space<vmem>>, vector<128x63xbf16>
    %cst_19 = arith.constant dense<0.000000e+00> : vector<8x63xf32>
    %24 = tpu.matmul %22, %23, %cst_19 {dimension_numbers = #tpu.dot_dimension_numbers<[1], [0], [0], [1], [0, 0, 1, 1], [], []>} : vector<8x128xbf16>, vector<128x63xbf16>, vector<8x63xf32> -> vector<8x63xf32>
    %c0_20 = arith.constant 0 : index
    %c0_21 = arith.constant 0 : index
    %25 = vector.load %arg9[%c0_20, %c0_21] : memref<1x63xf32, #tpu.memory_space<vmem>>, vector<1x63xf32>
    %26 = vector.broadcast %25 : vector<1x63xf32> to vector<8x63xf32>
    %27 = arith.addf %24, %26 : vector<8x63xf32>
    %28 = arith.truncf %27 : vector<8x63xf32> to vector<8x63xbf16>
    %c0_22 = arith.constant 0 : index
    %c0_23 = arith.constant 0 : index
    %29 = vector.load %arg10[%c0_22, %c0_23] : memref<8x63xbf16, #tpu.memory_space<vmem>>, vector<8x63xbf16>
    tpu.vector_store %arg10[%c0_22, %c0_23], %28 {strides = array<i32>} : memref<8x63xbf16, #tpu.memory_space<vmem>>, vector<8x63xbf16>,
    return
  }
  func.func @transform_0(%arg0: i32) -> (i32, i32) {
    %c0_i32 = arith.constant 0 : i32
    %c0_i32_0 = arith.constant 0 : i32
    return %arg0, %c0_i32 : i32, i32
  }
  func.func @transform_1(%arg0: i32) -> (i32, i32) {
    %c0_i32 = arith.constant 0 : i32
    %c0_i32_0 = arith.constant 0 : i32
    return %arg0, %c0_i32 : i32, i32
  }
  func.func @transform_2(%arg0: i32) -> (i32, i32) {
    %c0_i32 = arith.constant 0 : i32
    %c0_i32_0 = arith.constant 0 : i32
    %c0_i32_1 = arith.constant 0 : i32
    return %c0_i32, %c0_i32_0 : i32, i32
  }
  func.func @transform_3(%arg0: i32) -> (i32, i32) {
    %c0_i32 = arith.constant 0 : i32
    %c0_i32_0 = arith.constant 0 : i32
    %c0_i32_1 = arith.constant 0 : i32
    return %c0_i32, %c0_i32_0 : i32, i32
  }
  func.func @transform_4(%arg0: i32) -> (i32, i32) {
    %c0_i32 = arith.constant 0 : i32
    %c0_i32_0 = arith.constant 0 : i32
    %c0_i32_1 = arith.constant 0 : i32
    return %c0_i32, %c0_i32_0 : i32, i32
  }
  func.func @transform_5(%arg0: i32) -> (i32, i32) {
    %c0_i32 = arith.constant 0 : i32
    %c0_i32_0 = arith.constant 0 : i32
    %c0_i32_1 = arith.constant 0 : i32
    return %c0_i32, %c0_i32_0 : i32, i32
  }
  func.func @transform_6(%arg0: i32) -> (i32, i32) {
    %c0_i32 = arith.constant 0 : i32
    %c0_i32_0 = arith.constant 0 : i32
    %c0_i32_1 = arith.constant 0 : i32
    return %c0_i32, %c0_i32_0 : i32, i32
  }
  func.func @transform_7(%arg0: i32) -> (i32, i32) {
    %c0_i32 = arith.constant 0 : i32
    %c0_i32_0 = arith.constant 0 : i32
    %c0_i32_1 = arith.constant 0 : i32
    return %c0_i32, %c0_i32_0 : i32, i32
  }
  func.func @transform_8(%arg0: i32) -> (i32, i32) {
    %c0_i32 = arith.constant 0 : i32
    %c0_i32_0 = arith.constant 0 : i32
    %c0_i32_1 = arith.constant 0 : i32
    return %c0_i32, %c0_i32_0 : i32, i32
  }
  func.func @transform_9(%arg0: i32) -> (i32, i32) {
    %c0_i32 = arith.constant 0 : i32
    %c0_i32_0 = arith.constant 0 : i32
    return %arg0, %c0_i32 : i32, i32
  }
}

</mosaic_0001>

<bundles_post_ra>
// kernel: tpu_custom_call.1
= control target key start
LH: loop header
LB: loop body
LE: loop exit
PB: predicated region body
PF: predicated region fallthrough
CT: control target
= control target key end

     0   :  { %14 = vsyncpa [#allocation3], 0  ;;  %s696_s0 = inlined_call_operand.hbm [shape: f32[8,63], index: 0, kind: input, shape index: {}]   ;;  %s697_s1 = inlined_call_operand.hbm [shape: f32[8,6], index: 1, kind: input, shape index: {}]   ;;  %s698_s2 = inlined_call_operand.vmem [shape: bf16[63,128], index: 2, kind: input, shape index: {}]   ;;  %s699_s3 = inlined_call_operand.vmem [shape: bf16[6,128], index: 3, kind: input, shape index: {}]   ;;  %s700_s4 = inlined_call_operand.hbm [shape: f32[1,128], index: 4, kind: input, shape index: {}]   ;;  %s701_s5 = inlined_call_operand.vmem [shape: bf16[128,128], index: 5, kind: input, shape index: {}]   ;;  %s702_s6 = inlined_call_operand.vmem [shape: f32[1,128], index: 6, kind: input, shape index: {}]   ;;  %s703_s7 = inlined_call_operand.vmem [shape: bf16[128,63], index: 7, kind: input, shape index: {}]   ;;  %s704_s8 = inlined_call_operand.vmem [shape: f32[1,63], index: 8, kind: input, shape index: {}]   ;;  %s705_s9 = inlined_call_operand.hbm [shape: bf16[8,63], index: 9, kind: output, shape index: {}]  }
   0x1   :  { %15 = vsyncpa [#allocation6], 0  ;;  %s33_s11 = sshll.u32 %s697_s1, 4  ;;  %s34_s11 = int_to_ptr.hbm [resolvable:$true] %s33_s11 }
   0x2   :  { %16 = vsyncpa [#allocation4], 0  ;;  %s560_s12 = smov [#allocation5]   ;;  %s22_s16 = sshll.u32 %s696_s0, 4  ;;  %s23_s16 = int_to_ptr.hbm [resolvable:$true] %s22_s16 }
   0x3   :  { %s35_s13 = sshll.u32 %s560_s12, 4  ;;  %s561_s17 = smov [#allocation2]   ;;  %s36_s13 = int_to_ptr.vmem [resolvable:$true] %s35_s13 }
   0x4   :  { %38 = dma.hbm_to_vmem [thread:$0]  %s34_s11, 128, %s36_s13, [#allocation6]  }
   0x5   :  { %s24_s18 = sshll.u32 %s561_s17, 4  ;;  %s48_s21 = sshll.u32 %s700_s4, 4  ;;  %s25_s18 = int_to_ptr.vmem [resolvable:$true] %s24_s18  ;;  %s49_s21 = int_to_ptr.hbm [resolvable:$true] %s48_s21 }
   0x6   :  { %27 = dma.hbm_to_vmem [thread:$0]  %s23_s16, 128, %s25_s18, [#allocation3]  }
   0x7   :  { %s562_s1 = smov [#allocation7]  }
   0x8   :  { %s50_s22 = sshll.u32 %s562_s1, 4  ;;  %s51_s22 = int_to_ptr.vmem [resolvable:$true] %s50_s22 }
   0x9   :  { %53 = dma.hbm_to_vmem [thread:$0]  %s49_s21, 16, %s51_s22, [#allocation6]  }
   0xa   :  { %554 = dma.done.wait [#allocation3], 128  }
   0xb   :  { %555 = vsyncadd [#allocation3], 4294967168 }
   0xc   :  { %556 = dma.done.wait [#allocation6], 144  }
   0xd   :  { %557 = vsyncadd [#allocation6], 4294967152  ;;  %vm136_vm0 = vcmask 1046528   ;;  %vm137_vm1 = vcmask 1047552   ;;  %v563_v0 = vmov 65535   ;;  %vm92_vm2 = vcmask 1042432  }
   0xe   :  { %v138_v1 = vsel %vm136_vm0, 4294967295, %v563_v0  ;;  %v433_v3 = vld [vmem:[%s698_s2 + $0x18] sm:$0xff]  ;;  %v87_v4 = vld [vmem:[%s699_s3] sm:$0x7]  ;;  %v77_v6 = vld [vmem:[#allocation5] sm:$0xff]  ;;  %vm88_vm3 = vcmask 48128  }
   0xf   :  { %v139_v2 = vsel %vm137_vm1, %v138_v1, 0  ;;  %v94_v5 = vsel %vm92_vm2, %v87_v4, 0  ;;  %v78_v8 = vpack.c.bf16 %v77_v6, %v77_v6  ;;  %v441_v9 = vld [vmem:[%s701_s5 + $0x38] sm:$0xff]  ;;  %v432_v10 = vld [vmem:[%s698_s2 + $0x10] sm:$0xff]  ;;  %v431_v12 = vld [vmem:[%s698_s2 + $0x8] sm:$0xff]  ;;  %vm132_vm4 = vcmask 515072  }
  0x10   :  { %v141_v7 = vand.u32 %v433_v3, %v139_v2  ;;  %103 = vmatpush.bf16.msra.mxu0 %v94_v5  ;;  %231 = vmatpush.bf16.msra.mxu2 %v441_v9  ;;  %v440_v11 = vld [vmem:[%s701_s5 + $0x30] sm:$0xff]  ;;  %v439_v13 = vld [vmem:[%s701_s5 + $0x28] sm:$0xff]  ;;  %v430_v14 = vld [vmem:[%s698_s2] sm:$0xff]  ;;  %s564_s18 = smov [#allocation8]   ;;  %s337_s2 = sshll.u32 %s705_s9, 4  ;;  %vm328_vm5 = vcmask 510976   ;;  %s338_s2 = int_to_ptr.hbm [resolvable:$true] %s337_s2 }
  0x11   :  { %v75_v15 = vld [vmem:[#allocation2] sm:$0xff]  ;;  %v437_v18 = vld [vmem:[%s701_s5 + $0x18] sm:$0xff]  ;;  %v436_v19 = vld [vmem:[%s701_s5 + $0x10] sm:$0xff]  ;;  %s335_s19 = sshll.u32 %s564_s18, 4  ;;  %s336_s19 = int_to_ptr.vmem [resolvable:$true] %s335_s19 }
  0x12   :  { %147 = vmatpush.bf16.msra.mxu1 %v141_v7  ;;  %v438_v16 = vld [vmem:[%s701_s5 + $0x20] sm:$0xff]  ;;  %v76_v17 = vpack.c.bf16 %v75_v15, %v75_v15  ;;  %v435_v20 = vld [vmem:[%s701_s5 + $0x8] sm:$0xff]  ;;  %v449_v22 = vld [vmem:[%s703_s7 + $0x38] sm:$0xff] }
  0x13   :  { %348 = vmatmul.msk.bf16.vlgmr.msra.gmra.mxu0 %vm88_vm3, %v78_v8  ;;  %v434_v21 = vld [vmem:[%s701_s5] sm:$0xff]  ;;  %314 = vmatpush.bf16.msra.mxu3 %v449_v22  ;;  %v448_v23 = vld [vmem:[%s703_s7 + $0x30] sm:$0xff]  ;;  %v447_v24 = vld [vmem:[%s703_s7 + $0x28] sm:$0xff] }
  0x14   :  { %232 = vmatpush.bf16.msra.mxu2 %v440_v11  ;;  %v446_v26 = vld [vmem:[%s703_s7 + $0x20] sm:$0xff]  ;;  %v445_v27 = vld [vmem:[%s703_s7 + $0x18] sm:$0xff]  ;;  %v444_v29 = vld [vmem:[%s703_s7 + $0x10] sm:$0xff] }
  0x15   :  { %v455_v30 = vld [vmem:[#allocation7] ss:$0 sm:$0xff]  ;;  %v443_v37 = vld [vmem:[%s703_s7 + $0x8] sm:$0xff]  ;;  %v442_v38 = vld [vmem:[%s703_s7] sm:$0xff] }
  0x16   :  { %148 = vmatpush.bf16.msra.mxu1 %v432_v10  ;;  %v456_v39 = vld [vmem:[%s702_s6] ss:$0 sm:$0xff] }
  0x17   :  { %315 = vmatpush.bf16.msra.mxu3 %v448_v23  ;;  %v457_v45 = vld [vmem:[%s704_s8] ss:$0 sm:$0xff] }
  0x18   :  { %233 = vmatpush.bf16.msra.mxu2 %v439_v13 }
  0x1a   :  { %149 = vmatpush.bf16.msra.mxu1 %v431_v12 }
  0x1b   :  { %316 = vmatpush.bf16.msra.mxu3 %v447_v24 }
  0x1c   :  { %234 = vmatpush.bf16.msra.mxu2 %v438_v16 }
  0x1e   :  { %150 = vmatpush.bf16.msra.mxu1 %v430_v14 }
  0x1f   :  { %317 = vmatpush.bf16.msra.mxu3 %v446_v26 }
  0x20   :  { %235 = vmatpush.bf16.msra.mxu2 %v437_v18 }
  0x21   :  { %365 = vmatmul.msk.bf16.vlgmr.msra.gmra.mxu1 %vm132_vm4, %v76_v17 }
  0x23   :  { %318 = vmatpush.bf16.msra.mxu3 %v445_v27 }
  0x24   :  { %236 = vmatpush.bf16.msra.mxu2 %v436_v19 }
  0x27   :  { %319 = vmatpush.bf16.msra.mxu3 %v444_v29 }
  0x28   :  { %237 = vmatpush.bf16.msra.mxu2 %v435_v20 }
  0x2b   :  { %320 = vmatpush.bf16.msra.mxu3 %v443_v37 }
  0x2c   :  { %238 = vmatpush.bf16.msra.mxu2 %v434_v21 }
  0x2f   :  { %321 = vmatpush.bf16.msra.mxu3 %v442_v38 }
  0x90   :  { %v105_v25 = vpop.f32.mrf.mxu0 }
  0x98   :  { %v107_v28 = vpop.f32.mrf.mxu0 }
  0x9e   :  { %v152_v31 = vpop.f32.mrf.mxu1 }
  0x9f   :  { %v153_v32 = vadd.f32 %v152_v31, %v105_v25 }
  0xa1   :  { %v160_v33 = vadd.f32 %v455_v30, %v153_v32 }
  0xa3   :  { %v161_v34 = vmax.f32 %v160_v33, 0.0 }
  0xa5   :  { %v162_v35 = vpack.c.bf16 %v161_v34, %v161_v34 }
  0xa6   :  { %v154_v36 = vpop.f32.mrf.mxu1 }
  0xa7   :  { %239 = vmatmul.bf16.vlgmr.msra.gmra.mxu2 %v162_v35 }
 0x12a   :  { %v240_v40 = vpop.f32.mrf.mxu2 }
 0x12b   :  { %v241_v41 = vadd.f32 %v456_v39, %v240_v40 }
 0x12d   :  { %v244_v42 = vmax.f32 %v241_v41, 0.0 }
 0x12f   :  { %v245_v43 = vpack.c.bf16 %v244_v42, %v244_v42 }
 0x131   :  { %322 = vmatmul.bf16.vlgmr.msra.gmra.mxu3 %v245_v43 }
 0x132   :  { %v242_v44 = vpop.f32.mrf.mxu2 }
 0x1b4   :  { %v323_v46 = vpop.f32.mrf.mxu3 }
 0x1b5   :  { %v324_v47 = vadd.f32 %v457_v45, %v323_v46 }
 0x1b7   :  { %v327_v48 = vpack.c.bf16 %v324_v47, %v324_v47 }
 0x1b9   :  { %329 = vst.msk [vmem:[#allocation8] sm:$0xf] %vm328_vm5, %v327_v48 }
 0x1ba   :  { %340 = dma.vmem_to_hbm [thread:$0]  %s336_s19, 64, %s338_s2, [#allocation4]  }
 0x1bc   :  { %v325_v49 = vpop.f32.mrf.mxu3 }
 0x1bd   :  { %558 = dma.done.wait [#allocation4], 64  }
 0x1be   :  { %559 = vsyncadd [#allocation4], 4294967232 }
 0x1bf   :  { %345 = vsyncpa [#allocation3], 1 }
 0x1c0   :  { %346 = vsyncpa [#allocation6], 1 }
 0x1c1   :  { %347 = vsyncpa [#allocation4], 1 }

</bundles_post_ra>
